<compile_context>
chip_gen: v7x
topology: tpu7x:2x2x1
jax: 0.10.0
libtpu: 0.0.40
codegen_flags: <defaults>
</compile_context>

<pallas_src>
import functools
import math

import numpy as np
import jax
import jax.numpy as jnp
from jax import lax
from jax.experimental import pallas as pl
from jax.experimental.pallas import tpu as pltpu


def _cdiv(a, b):
    return -(-a // b)


def _round_up(v, m):
    return _cdiv(v, m) * m


def _round_down(v, m):
    return (v // m) * m


def _norm_sum_kernel(x_ref, seg_ref, out_ref, acc_ref, *,
                     rows, tm, n_tiles, chunk, r):
    """Accumulates the sum of per-token L2 norms over this core's row range.

    x_ref:   (tm, W) block, W = r*D (r tokens packed per 128-aligned row).
    seg_ref: (W, r) block-diagonal ones (resident; only used when r > 1).
    out_ref: (8, 128) per-core block, filled with the partial norm sum on the
             last inner step.
    acc_ref: (chunk, r) f32 VMEM running partial sums (per-core scratch).
    """
    c = pl.program_id(0)
    i = pl.program_id(1)

    @pl.when(i == 0)
    def _init():
        acc_ref[...] = jnp.zeros_like(acc_ref)

    # Valid (real-data) packed rows in this tile.  <= 0 for fully
    # out-of-range grid steps (their input block index is clamped in the
    # index_map, and everything they read is masked away here).  Because the
    # packing reshape is only used when M % r == 0, masking whole packed rows
    # is exact and the final divisor can stay exactly M.
    valid = rows - (c * n_tiles + i) * tm

    def chunk_body(k, carry):
        start = pl.multiple_of(k * chunk, chunk)
        xc = x_ref[pl.ds(start, chunk), :].astype(jnp.float32)
        ridx = lax.broadcasted_iota(jnp.int32, (chunk, 1), 0) + start
        xc = jnp.where(ridx < valid, xc, 0.0)          # mask BEFORE squaring
        xx = xc * xc
        if r > 1:
            # Per-token segment sums via block-diagonal ones on the idle MXU:
            # (chunk, r*D) @ (r*D, r) -> (chunk, r).
            sq = jnp.dot(xx, seg_ref[...], preferred_element_type=jnp.float32)
        else:
            sq = jnp.sum(xx, axis=-1, keepdims=True)    # (chunk, 1)
        acc_ref[...] += jnp.sqrt(sq)
        return carry

    lax.fori_loop(0, tm // chunk, chunk_body, 0, unroll=True)

    @pl.when(i == n_tiles - 1)
    def _finish():
        out_ref[...] = jnp.full(out_ref.shape, jnp.sum(acc_ref[...]),
                                dtype=jnp.float32)


def support_loss(tokens_delta: jax.Array, support: float,
                 alpha: float = 0.001,
                 *, target_block_bytes: int = 8 * 1024 * 1024,
                 n_cores: int = 2) -> jax.Array:
    """Pallas implementation of SupportLoss.forward.  Returns a scalar f32."""
    inv_support = 1.0 / support
    D = int(tokens_delta.shape[-1])
    M = int(np.prod(tokens_delta.shape[:-1]))
    x = tokens_delta.reshape(M, D)                  # free (layout-preserving)
    itemsize = x.dtype.itemsize

    # Lane-dense packing: r tokens per 128-aligned row, but only when the
    # packing reshape is a pure bitcast (M % r == 0) -- never pad in HBM.
    r = 128 // math.gcd(D, 128)
    if r > 16 or M % r != 0:
        r = 1
    W = r * D
    rows = M // r
    if r > 1:
        x = x.reshape(rows, W)                      # still a free reshape

    # Block-diagonal ones (W, r): seg[k, j] = 1 iff k // D == j.  Built once
    # at trace time, passed as a tiny resident input with a constant index_map.
    seg_np = np.zeros((W, r), dtype=np.float32)
    for j in range(r):
        seg_np[j * D:(j + 1) * D, j] = 1.0
    seg = jnp.asarray(seg_np)

    # ---- Tile sizing --------------------------------------------------------
    sub = {4: 8, 2: 16, 1: 32}.get(itemsize, 8)     # dtype-native sublane rows
    rows_pad = _round_up(rows, sub)
    # ~1 MiB of f32 intermediates per in-body chunk so xx never materializes
    # full-tile (keeps the big-tile VMEM budget safe on v7x's 64 MiB).
    chunk = max(sub, min(_round_down((1 << 18) // max(W, 1), sub), 1024))
    chunk = min(chunk, rows_pad)
    # Biggest tile (multiple of chunk) whose native-dtype block <= target.
    tm_cap = max(chunk, _round_down(target_block_bytes // (W * itemsize), chunk))
    tm = min(tm_cap, _round_up(rows_pad, chunk))

    n_blocks = _cdiv(rows, tm)
    n_cores_eff = n_cores if (n_cores > 1 and n_blocks >= n_cores) else 1
    n_tiles = _cdiv(_cdiv(rows, n_cores_eff), tm)
    max_block = n_blocks - 1        # last block holding at least one valid row

    def x_index_map(c, i):
        # Clamp so fully out-of-range grid steps re-read the last valid block
        # (their contribution is masked to zero inside the kernel).
        return (jnp.minimum(c * n_tiles + i, max_block), 0)

    kernel = functools.partial(_norm_sum_kernel, rows=rows, tm=tm,
                               n_tiles=n_tiles, chunk=chunk, r=r)

    tile_bytes = tm * W * itemsize
    vmem_est = (2 * tile_bytes                   # double-buffered input tile
                + 4 * chunk * W * 4              # in-body f32 chunk temporaries
                + chunk * 128 * 4                # accumulator (lane-padded)
                + W * 128 * 4                    # resident seg block
                + n_cores_eff * 8 * 128 * 4)     # output
    vmem_limit = int(min(48 * 1024 * 1024, max(16 * 1024 * 1024, 2 * vmem_est)))

    cost = pl.CostEstimate(
        flops=2 * M * D + 2 * rows * W * r,
        transcendentals=M,
        bytes_accessed=M * D * itemsize + W * r * 4 + n_cores_eff * 8 * 128 * 4,
    )

    out = pl.pallas_call(
        kernel,
        out_shape=jax.ShapeDtypeStruct((n_cores_eff * 8, 128), jnp.float32),
        grid_spec=pltpu.PrefetchScalarGridSpec(
            num_scalar_prefetch=0,
            grid=(n_cores_eff, n_tiles),
            in_specs=[
                pl.BlockSpec((tm, W), x_index_map),
                pl.BlockSpec((W, r), lambda c, i: (0, 0)),   # resident constant
            ],
            out_specs=pl.BlockSpec((8, 128), lambda c, i: (c, 0)),
            scratch_shapes=[pltpu.VMEM((chunk, r), jnp.float32)],
        ),
        compiler_params=pltpu.CompilerParams(
            # On v7x the "parallel" core axis should shard across the 2 TCs
            # (scratch/accumulator is per-core); on single-TC v5e/v6e it is a
            # cheap sequential loop.  Switch to pltpu.CORE_PARALLEL if a v7x
            # profile shows it running sequentially.
            dimension_semantics=("parallel", "arbitrary"),
            vmem_limit_bytes=vmem_limit,
        ),
        cost_estimate=cost,
    )(x, seg)

    # Combine per-core partial sums; scalar epilogue mirrors the PyTorch code.
    norm_sum = jnp.sum(out[::8, 0])
    mean_norm = norm_sum / jnp.float32(M)
    delta = jnp.float32(support) - mean_norm
    quad_branch = jnp.float32(alpha) * delta * delta
    log_branch = -delta * jnp.log(mean_norm * jnp.float32(inv_support))
    return jnp.where(delta > jnp.float32(-1e-6), quad_branch, log_branch)


def support_loss_ref(tokens_delta, support, alpha=0.001):
    """Pure-JAX reference (mirrors the PyTorch module)."""
    token_norms = jnp.linalg.norm(tokens_delta.astype(jnp.float32), axis=-1)
    mean_norm = jnp.mean(token_norms)
    delta = support - mean_norm
    return jnp.where(delta > -1e-6,
                     alpha * delta ** 2,
                     -delta * jnp.log(mean_norm * (1.0 / support)))


if __name__ == "__main__":
    key = jax.random.PRNGKey(0)
    support = 2.0
    alpha = 0.001

    # batch=2, seq=8, hidden=32  ->  tokens_delta: (2, 8, 32)
    tokens_delta = jax.random.normal(key, (2, 8, 32), dtype=jnp.float32)

    # Case 1: typical input (mean norm > support -> log branch), packed D=32.
    out1 = jax.block_until_ready(support_loss(tokens_delta, support, alpha))
    ref1 = support_loss_ref(tokens_delta, support, alpha)
    np.testing.assert_allclose(np.asarray(out1), np.asarray(ref1),
                               rtol=1e-5, atol=1e-6)

    # Case 2: small deltas (mean norm < support -> quadratic branch).
    out2 = jax.block_until_ready(support_loss(0.01 * tokens_delta, support, alpha))
    ref2 = support_loss_ref(0.01 * tokens_delta, support, alpha)
    np.testing.assert_allclose(np.asarray(out2), np.asarray(ref2),
                               rtol=1e-5, atol=1e-6)

    # Case 3: token count not divisible by the packing factor -> unpacked
    # (r=1) path with in-kernel tail masking, no padding anywhere.
    td3 = jax.random.normal(jax.random.PRNGKey(1), (3, 7, 32), dtype=jnp.float32)
    out3 = jax.block_until_ready(support_loss(td3, support, alpha))
    ref3 = support_loss_ref(td3, support, alpha)
    np.testing.assert_allclose(np.asarray(out3), np.asarray(ref3),
                               rtol=1e-5, atol=1e-6)

    # Case 4: wide feature dim (D multiple of 128 -> plain lane-reduce path).
    td4 = jax.random.normal(jax.random.PRNGKey(2), (2, 4, 256), dtype=jnp.float32)
    out4 = jax.block_until_ready(support_loss(td4, support, alpha))
    ref4 = support_loss_ref(td4, support, alpha)
    np.testing.assert_allclose(np.asarray(out4), np.asarray(ref4),
                               rtol=1e-5, atol=1e-6)

    # Case 5: bf16 input stays bf16 in HBM; the f32 cast happens in-kernel.
    td5 = tokens_delta.astype(jnp.bfloat16)
    out5 = jax.block_until_ready(support_loss(td5, support, alpha))
    ref5 = support_loss_ref(td5, support, alpha)
    np.testing.assert_allclose(np.asarray(out5), np.asarray(ref5),
                               rtol=1e-4, atol=1e-5)

    # Case 6: forces the multi-tile / 2-core / multi-chunk / clamped-tail path
    # (small target block so the test stays tiny; defaults give 8 MiB tiles).
    td6 = jax.random.normal(jax.random.PRNGKey(3), (10, 1000, 64), dtype=jnp.float32)
    out6 = jax.block_until_ready(
        support_loss(td6, support, alpha, target_block_bytes=1310720))
    ref6 = support_loss_ref(td6, support, alpha)
    np.testing.assert_allclose(np.asarray(out6), np.asarray(ref6),
                               rtol=2e-5, atol=1e-6)

    print("KERNEL_OK")
</pallas_src>

<mosaic_0001>
module attributes {stable_mosaic.version = 11 : i64} {
  func.func @_norm_sum_kernel(%arg0: i32, %arg1: i32, %arg2: memref<8x128xf32, #tpu.memory_space<vmem>>, %arg3: memref<128x4xf32, #tpu.memory_space<vmem>>, %arg4: memref<8x128xf32, #tpu.memory_space<vmem>>, %arg5: memref<8x4xf32, #tpu.memory_space<vmem>>) attributes {dimension_semantics = [#tpu.dimension_semantics<parallel>, #tpu.dimension_semantics<arbitrary>], iteration_bounds = array<i64: 1, 1>, scalar_prefetch = 0 : i64, scratch_operands = 1 : i64, tpu.core_type = #tpu.core_type<tc>, window_params = [{transform_indices = @transform_0, window_bounds = array<i64: 8, 128>}, {pipeline_mode = #tpu.pipeline_mode<synchronous>, transform_indices = @transform_1, window_bounds = array<i64: 128, 4>}, {transform_indices = @transform_2, window_bounds = array<i64: 8, 128>}]} {
    %c0_i32 = arith.constant 0 : i32
    %0 = arith.cmpi eq, %arg1, %c0_i32 : i32
    %1 = arith.extui %0 : i1 to i32
    %c0_i32_0 = arith.constant 0 : i32
    %2 = arith.cmpi ne, %1, %c0_i32_0 : i32
    scf.if %2 {
      %cst_13 = arith.constant 0.000000e+00 : f32
      %30 = vector.broadcast %cst_13 : f32 to vector<8x4xf32>
      %c0_14 = arith.constant 0 : index
      %c0_15 = arith.constant 0 : index
      %31 = vector.load %arg5[%c0_14, %c0_15] : memref<8x4xf32, #tpu.memory_space<vmem>>, vector<8x4xf32>
      tpu.vector_store %arg5[%c0_14, %c0_15], %30 {strides = array<i32>} : memref<8x4xf32, #tpu.memory_space<vmem>>, vector<8x4xf32>,
    } else {
    }
    %c1_i32 = arith.constant 1 : i32
    %3 = arith.muli %arg0, %c1_i32 : i32
    %4 = arith.addi %3, %arg1 : i32
    %c8_i32 = arith.constant 8 : i32
    %5 = arith.muli %4, %c8_i32 : i32
    %c4_i32 = arith.constant 4 : i32
    %6 = arith.subi %c4_i32, %5 : i32
    %c0_i32_1 = arith.constant 0 : i32
    %c8_i32_2 = arith.constant 8 : i32
    %7 = arith.muli %c0_i32_1, %c8_i32_2 : i32
    %8 = tpu.assume_multiple %7, 8 : i32
    %9 = arith.index_cast %8 : i32 to index
    %c0 = arith.constant 0 : index
    %10 = vector.load %arg2[%9, %c0] : memref<8x128xf32, #tpu.memory_space<vmem>>, vector<8x128xf32>
    %11 = tpu.iota {dimensions = array<i32: 0>} : vector<8x1xi32>
    %12 = vector.broadcast %8 : i32 to vector<8x1xi32>
    %13 = arith.addi %11, %12 : vector<8x1xi32>
    %14 = vector.broadcast %6 : i32 to vector<8x1xi32>
    %15 = arith.cmpi slt, %13, %14 : vector<8x1xi32>
    %cst = arith.constant 0.000000e+00 : f32
    %16 = vector.shape_cast %15 : vector<8x1xi1> to vector<8x1xi1>
    %17 = vector.broadcast %16 : vector<8x1xi1> to vector<8x128xi1>
    %18 = vector.broadcast %cst : f32 to vector<8x128xf32>
    %19 = arith.select %17, %10, %18 : vector<8x128xi1>, vector<8x128xf32>
    %20 = arith.mulf %19, %19 : vector<8x128xf32>
    %c0_3 = arith.constant 0 : index
    %c0_4 = arith.constant 0 : index
    %21 = vector.load %arg3[%c0_3, %c0_4] : memref<128x4xf32, #tpu.memory_space<vmem>>, vector<128x4xf32>
    %cst_5 = arith.constant dense<0.000000e+00> : vector<8x4xf32>
    %22 = tpu.matmul %20, %21, %cst_5 {dimension_numbers = #tpu.dot_dimension_numbers<[1], [0], [0], [1], [0, 0, 1, 1], [], []>} : vector<8x128xf32>, vector<128x4xf32>, vector<8x4xf32> -> vector<8x4xf32>
    %c0_6 = arith.constant 0 : index
    %c0_7 = arith.constant 0 : index
    %23 = vector.load %arg5[%c0_6, %c0_7] : memref<8x4xf32, #tpu.memory_space<vmem>>, vector<8x4xf32>
    %24 = math.sqrt %22 : vector<8x4xf32>
    %25 = arith.addf %23, %24 : vector<8x4xf32>
    %c0_8 = arith.constant 0 : index
    %c0_9 = arith.constant 0 : index
    %26 = vector.load %arg5[%c0_8, %c0_9] : memref<8x4xf32, #tpu.memory_space<vmem>>, vector<8x4xf32>
    tpu.vector_store %arg5[%c0_8, %c0_9], %25 {strides = array<i32>} : memref<8x4xf32, #tpu.memory_space<vmem>>, vector<8x4xf32>,
    %c1_i32_10 = arith.constant 1 : i32
    %c0_i32_11 = arith.constant 0 : i32
    %27 = arith.cmpi eq, %arg1, %c0_i32_11 : i32
    %28 = arith.extui %27 : i1 to i32
    %c0_i32_12 = arith.constant 0 : i32
    %29 = arith.cmpi ne, %28, %c0_i32_12 : i32
    scf.if %29 {
      %c0_13 = arith.constant 0 : index
      %c0_14 = arith.constant 0 : index
      %30 = vector.load %arg5[%c0_13, %c0_14] : memref<8x4xf32, #tpu.memory_space<vmem>>, vector<8x4xf32>
      %31 = vector.shape_cast %30 : vector<8x4xf32> to vector<1x8x4xf32>
      %cst_15 = arith.constant dense<0.000000e+00> : vector<1xf32>
      %32 = vector.multi_reduction <add>, %31, %cst_15 [1, 2] : vector<1x8x4xf32> to vector<1xf32>
      %33 = vector.shape_cast %32 : vector<1xf32> to vector<1x1x1xf32>
      %34 = vector.extract %33[0, 0, 0] : f32 from vector<1x1x1xf32>
      %35 = vector.broadcast %34 : f32 to vector<8x128xf32>
      %c0_16 = arith.constant 0 : index
      %c0_17 = arith.constant 0 : index
      %36 = vector.load %arg4[%c0_16, %c0_17] : memref<8x128xf32, #tpu.memory_space<vmem>>, vector<8x128xf32>
      tpu.vector_store %arg4[%c0_16, %c0_17], %35 {strides = array<i32>} : memref<8x128xf32, #tpu.memory_space<vmem>>, vector<8x128xf32>,
    } else {
    }
    return
  }
  func.func @transform_0(%arg0: i32, %arg1: i32) -> (i32, i32) {
    %c1_i32 = arith.constant 1 : i32
    %0 = arith.muli %arg0, %c1_i32 : i32
    %1 = arith.addi %0, %arg1 : i32
    %c0_i32 = arith.constant 0 : i32
    %2 = arith.minsi %1, %c0_i32 : i32
    %c0_i32_0 = arith.constant 0 : i32
    %c0_i32_1 = arith.constant 0 : i32
    return %2, %c0_i32_0 : i32, i32
  }
  func.func @transform_1(%arg0: i32, %arg1: i32) -> (i32, i32) {
    %c0_i32 = arith.constant 0 : i32
    %c0_i32_0 = arith.constant 0 : i32
    %c0_i32_1 = arith.constant 0 : i32
    return %c0_i32, %c0_i32_0 : i32, i32
  }
  func.func @transform_2(%arg0: i32, %arg1: i32) -> (i32, i32) {
    %c0_i32 = arith.constant 0 : i32
    %c0_i32_0 = arith.constant 0 : i32
    return %arg0, %c0_i32 : i32, i32
  }
}

</mosaic_0001>

<bundles_post_ra>
// kernel: tpu_custom_call.1
= control target key start
LH: loop header
LB: loop body
LE: loop exit
PB: predicated region body
PF: predicated region fallthrough
CT: control target
= control target key end

     0   :  { %vm58_vm0 = vcmask 31744   ;;  %v316_v3 = vmov 0.0|0.0   ;;  %v317_v6 = vmov 0.0   ;;  %vm318_vm1 = vmmov 0   ;;  %s401_s0 = inlined_call_operand.vmem [shape: f32[4,128], index: 0, kind: input, shape index: {}]   ;;  %s402_s1 = inlined_call_operand.vmem [shape: f32[128,4], index: 1, kind: input, shape index: {}]   ;;  %s403_s2 = inlined_call_operand.hbm [shape: f32[8,128], index: 2, kind: output, shape index: {}]  }
   0x1   :  { %v74_v0 = vld [vmem:[%s402_s1] sm:$0xff]  ;;  %v75_v1 = vld [vmem:[%s402_s1 + $0x8] sm:$0xff]  ;;  %v76_v2 = vld [vmem:[%s402_s1 + $0x10] sm:$0xff]  ;;  %260 = vmatprep.subr.bf16.mxu0 %v316_v3  ;;  %59 = vst.msk [vmem:[#allocation2] sm:$0xff] %vm58_vm0, %v317_v6  ;;  %257 = vmatprep.mubr.msk.f32.mxu0 %vm318_vm1, %v317_v6 }
   0x2   :  { %v261_v4 = vpack.c.bf16 %v75_v1, %v74_v0  ;;  %v77_v5 = vld [vmem:[%s402_s1 + $0x18] sm:$0xff]  ;;  %v78_v8 = vld [vmem:[%s402_s1 + $0x20] sm:$0xff]  ;;  %v79_v9 = vld [vmem:[%s402_s1 + $0x28] sm:$0xff] }
   0x3   :  { %v264_v7 = vpack.c.bf16 %v77_v5, %v76_v2 }
   0x4   :  { %262 = vmatpush3.bf16.msra.mxu0 %v261_v4 }
   0x5   :  { %263 = vmatprep.subr.bf16.mxu0 %v316_v3 }
   0x6   :  { %7 = vsyncpa [#allocation4], 0  ;;  %v267_v10 = vpack.c.bf16 %v79_v9, %v78_v8  ;;  %v80_v11 = vld [vmem:[%s402_s1 + $0x30] sm:$0xff]  ;;  %v81_v12 = vld [vmem:[%s402_s1 + $0x38] sm:$0xff] }
   0x7   :  { %v270_v13 = vpack.c.bf16 %v81_v12, %v80_v11  ;;  %v82_v14 = vld [vmem:[%s402_s1 + $0x40] sm:$0xff]  ;;  %v83_v15 = vld [vmem:[%s402_s1 + $0x48] sm:$0xff]  ;;  %v84_v17 = vld [vmem:[%s402_s1 + $0x50] sm:$0xff] }
   0x8   :  { %265 = vmatpush3.bf16.msra.mxu0 %v264_v7  ;;  %v273_v16 = vpack.c.bf16 %v83_v15, %v82_v14  ;;  %v85_v18 = vld [vmem:[%s402_s1 + $0x58] sm:$0xff]  ;;  %v86_v20 = vld [vmem:[%s402_s1 + $0x60] sm:$0xff]  ;;  %v87_v21 = vld [vmem:[%s402_s1 + $0x68] sm:$0xff] }
   0x9   :  { %266 = vmatprep.subr.bf16.mxu0 %v316_v3  ;;  %v276_v19 = vpack.c.bf16 %v85_v18, %v84_v17  ;;  %v279_v22 = vpack.c.bf16 %v87_v21, %v86_v20  ;;  %v88_v23 = vld [vmem:[%s402_s1 + $0x70] sm:$0xff]  ;;  %v89_v24 = vld [vmem:[%s402_s1 + $0x78] sm:$0xff]  ;;  %v207_v26 = vld [vmem:[%s401_s0] sm:$0xf]  ;;  %s319_s0 = smov [#allocation3]  }
   0xa   :  { %v282_v25 = vpack.c.bf16 %v89_v24, %v88_v23  ;;  %v73_v27 = vmul.f32 %v207_v26, %v207_v26  ;;  %v160_v32 = vld [vmem:[#allocation2] sm:$0xff]  ;;  %s193_s1 = sshll.u32 %s319_s0, 4  ;;  %s194_s1 = int_to_ptr.vmem [resolvable:$true] %s193_s1 }
   0xb   :  { %s292_s16 = scalar_lea.vmem %s194_s1, 128  ;;  %p297_p1 = scmp.lt.s32.totalorder %s194_s1, %s194_s1 }
   0xc   :  { %268 = vmatpush3.bf16.msra.mxu0 %v267_v10  ;;  %p293_p0 = scmp.ne.s32.totalorder %s194_s1, %s292_s16  ;;  %p298_p2 = scmp.lt.s32.totalorder %s292_s16, %s292_s16 }
   0xd   :  { %269 = vmatprep.subr.bf16.mxu0 %v316_v3 }
   0xe   :  { %p299_p3 = por %p298_p2, %p297_p1 }
  0x10   :  { %271 = vmatpush3.bf16.msra.mxu0 %v270_v13  ;;  %p300_p4 = pnand %p299_p3, %p293_p0 }
  0x11   :  { %272 = vmatprep.subr.bf16.mxu0 %v316_v3 }
  0x14   :  { %274 = vmatpush3.bf16.msra.mxu0 %v273_v16 }
  0x15   :  { %275 = vmatprep.subr.bf16.mxu0 %v316_v3 }
  0x18   :  { %277 = vmatpush3.bf16.msra.mxu0 %v276_v19 }
  0x19   :  { %278 = vmatprep.subr.bf16.mxu0 %v316_v3 }
  0x1c   :  { %280 = vmatpush3.bf16.msra.mxu0 %v279_v22 }
  0x1d   :  { %281 = vmatprep.subr.bf16.mxu0 %v316_v3 }
  0x20   :  { %283 = vmatpush3.bf16.msra.mxu0 %v282_v25 }
  0x23   :  { %258 = vmatmul.mubr.f32.vlgmr.msra.gmra.mrb[0].mxu0 %v73_v27 }
  0xf6   :  { %v156_v28 = vpop.f32.mrb[0].mxu0 }
  0xf7   :  { %290 = vrsqrt.f32 %v156_v28  ;;  %v259_v29 = vpop.f32.mrb[1].mxu0  ;;  %vm163_vm2 = vcmp.eq.f32.partialorder %v156_v28, inf  ;;  %v166_v33 = vand.u32 2147483648, %v156_v28  ;;  %vm165_vm3 = vcmp.eq.f32.partialorder %v156_v28, 0.0 }
 0x101   :  { %v291_v30 = vpop.eup %290 }
 0x102   :  { %v162_v31 = vmul.f32 %v291_v30, %v156_v28 }
 0x104   :  { %v164_v34 = vsel %vm163_vm2, %v156_v28, %v162_v31 }
 0x105   :  { %v167_v35 = vsel %vm165_vm3, %v166_v33, %v164_v34 }
 0x106   :  { %v168_v36 = vadd.f32 %v167_v35, %v160_v32 }
 0x108   :  { %170 = vst.msk [vmem:[#allocation2] sm:$0xff] %vm58_vm0, %v168_v36 }
 0x10f   :  { %v174_v37 = vld [vmem:[#allocation2] sm:$0xff] }
 0x110   :  { %v175_v38 = vsel %vm58_vm0, %v174_v37, 0.0 }
 0x111   :  { %176 = vadd.xlane.f32.xlu0 %v175_v38 }
 0x19e   :  { %v177_v39 = vpop.xlane.xlu0 %176 }
 0x19f   :  { %v178_v40 = vrot.slane %v177_v39, 4 }
 0x1a1   :  { %v179_v41 = vadd.f32 %v178_v40, %v177_v39 }
 0x1a3   :  { %v180_v42 = vrot.slane %v179_v41, 2 }
 0x1a5   :  { %v181_v43 = vadd.f32 %v180_v42, %v179_v41 }
 0x1a7   :  { %v182_v44 = vrot.slane %v181_v43, 1 }
 0x1a9   :  { %v183_v45 = vadd.f32 %v182_v44, %v181_v43 }
 0x1ab   :  { %284 = vpush %v183_v45 }
 0x1dc   :  { %s285_s15 = spop %284 }
 0x1dd   :  { %v185_v46 = vstv %s285_s15 }
 0x1de   :  { %186 = vst [vmem:[#allocation3] sm:$0xff] %v185_v46 }
 0x1df   :  { %303 = shalt.err (!%p300_p4)
}
 0x1e0   :  { %s304_s19 = scalar_lea.hbm %s403_s2, 128 }
 0x1e1   :  { %p305_p5 = scmp.ne.s32.totalorder %s403_s2, %s304_s19  ;;  %p308_p6 = scmp.lt.u32.totalorder %s304_s19, %s403_s2 }
 0x1e3   :  { %p310_p7 = pnand %p308_p6, %p305_p5 }
 0x1e5   :  { %313 = shalt.err (!%p310_p7)
}
 0x1e6   :  { %196 = dma.vmem_to_hbm [thread:$0]  %s194_s1, 128, %s403_s2, [#allocation4]  }
 0x1e7   :  { %314 = dma.done.wait [#allocation4], 128  }
 0x1e8   :  { %315 = vsyncadd [#allocation4], 4294967168 }
 0x1e9   :  { %200 = vsyncpa [#allocation4], 1 }

</bundles_post_ra>
